<compile_context>
chip_gen: v7x
topology: tpu7x:2x2x1
jax: 0.10.0
libtpu: 0.0.40
codegen_flags: <defaults>
</compile_context>

<pallas_src>
import functools

import jax
import jax.numpy as jnp
from jax.experimental import pallas as pl
from jax.experimental.pallas import tpu as pltpu


def _fusion_kernel(n_views, *refs):
    """Fused: mean-pool over views -> Linear(D->V) -> masked softmax -> weighted sum.

    refs layout:
      refs[0:V]   : view_v     (TB, D)     input dtype (f32/bf16), one per view
      refs[V]     : w_t        (D, V_pad)  bf16, pre-transposed, lane-padded,
                                           pre-scaled by 1/V linear weight
      refs[V+1]   : bias_mask  (1, V_pad)  f32, bias + (0 / -inf) additive mask
      refs[V+2]   : joint_ref  (TB, D)     output (f32 by default)
      refs[V+3]   : att_ref    (TB, V)     f32 output (only the V real columns)
    """
    V = n_views
    view_refs = refs[:V]
    wt_ref, bias_mask_ref = refs[V], refs[V + 1]
    joint_ref, att_ref = refs[V + 2], refs[V + 3]

    # ---- mean pooling over views (f32 accumulation).  The 1/V scale is folded
    # into w_t on the host, so only the sum is needed here.
    pooled = view_refs[0][...].astype(jnp.float32)               # (TB, D)
    for v in range(1, V):
        pooled = pooled + view_refs[v][...].astype(jnp.float32)

    # ---- attention logits on the MXU (bf16 operands, f32 accumulate) plus the
    # additive (bias & missing-view & lane-pad) mask prepared on the host.
    logits = jnp.dot(pooled.astype(jnp.bfloat16), wt_ref[...],
                     preferred_element_type=jnp.float32)         # (TB, V_pad)
    masked = logits + bias_mask_ref[...]                         # -inf on missing/pad

    # ---- softmax over the views axis (padded / missing columns -> exactly 0)
    m = jnp.max(masked, axis=-1, keepdims=True)
    e = jnp.exp(masked - m)
    denom = jnp.sum(e, axis=-1, keepdims=True)
    att = e * pl.reciprocal(denom, approx=True)                  # (TB, V_pad) f32

    # att used for the weighted sum: scrub NaN rows (all views missing) once so
    # view * 0 reproduces torch.nansum's zero contribution.  The returned att
    # keeps the NaNs (matches torch softmax of an all -inf row).
    att_ws = jnp.where(jnp.isnan(att), jnp.float32(0.0), att)

    # ---- weighted sum over views: multiply in the view's native dtype
    # (bf16 VALU on v6e/v7x), accumulate in f32.  NaN view elements are
    # scrubbed once per view (torch.nansum semantics).
    acc = jnp.zeros_like(pooled)                                 # (TB, D) f32
    for v in range(V):
        xv = view_refs[v][...]
        xv = jnp.where(jnp.isnan(xv), jnp.array(0, xv.dtype), xv)
        a_col = att_ws[:, v:v + 1].astype(xv.dtype)              # (TB, 1)
        acc = acc + (xv * a_col).astype(jnp.float32)

    joint_ref[...] = acc.astype(joint_ref.dtype)
    # Only the V real attention columns are written back (no padded f32 slab).
    att_ref[...] = att[:, :V].astype(att_ref.dtype)


def _vmem_limit_bytes():
    """Scoped-VMEM limit per generation: 64 MiB on 128-MiB parts (v5e/v6e),
    32 MiB on 64-MiB parts (v7x)."""
    try:
        cap = pltpu.get_tpu_info().vmem_capacity_bytes
    except Exception:
        cap = 64 * 1024 * 1024          # conservative (v7x-sized) fallback
    if cap >= 128 * 1024 * 1024:
        return 64 * 1024 * 1024
    return 32 * 1024 * 1024


def _pick_batch_tile(B, V, D, view_itemsize, vmem_limit):
    """Batch tile from a per-block byte budget (resident params subtracted),
    rounded to the dtype packing granularity, capped at ceil(B/2) so both v7x
    TensorCores get grid steps, and shrunk to a divisor of B."""
    gran = max(8, 32 // max(view_itemsize, 1))       # f32 -> 8, bf16 -> 16, i8 -> 32
    if B <= gran:
        return B
    budget = (vmem_limit * 3) // 4                   # headroom for compiler scratch
    resident = D * 128 * 2 + 128 * 4                 # w_t (bf16) + bias_mask (f32)
    # double-buffered view blocks + joint (f32) + att (f32) blocks, per batch row
    per_row = 2 * (V * D * view_itemsize + D * 4 + V * 4)
    tb = (budget - resident) // max(per_row, 1)
    half = ((B + 1) // 2 + gran - 1) // gran * gran  # ceil(B/2) rounded up to gran
    tb = max(gran, min(tb, half, 4096))
    tb = (tb // gran) * gran
    while tb > gran and B % tb != 0:                 # avoid overhanging edge blocks
        tb -= gran
    if tb <= 0 or B % tb != 0:
        return B
    return tb


def fusion_forward(views_emb, views_available, weight, bias, *,
                   batch_tile=None, joint_dtype=jnp.float32):
    """views_emb: list of V arrays (B, D); views_available: bool (V,);
    weight: (V, D); bias: (V,)."""
    V = len(views_emb)
    B, D = views_emb[0].shape
    V_pad = max(128, ((V + 127) // 128) * 128)

    # Pre-transposed, lane-padded, 1/V-scaled linear weight in bf16: (D, V_pad).
    w_scaled = weight.astype(jnp.float32).T * jnp.float32(1.0 / V)
    w_t = jnp.zeros((D, V_pad), jnp.bfloat16).at[:, :V].set(w_scaled.astype(jnp.bfloat16))

    # Bias fused with the additive missing-view mask; padded columns -> -inf
    # so their softmax weight is exactly 0.
    avail = views_available.astype(bool).reshape(V)
    bias_col = jnp.where(avail, bias.astype(jnp.float32), -jnp.inf)
    bias_mask = jnp.full((1, V_pad), -jnp.inf, jnp.float32).at[0, :V].set(bias_col)

    itemsize = jnp.dtype(views_emb[0].dtype).itemsize
    vmem_limit = _vmem_limit_bytes()
    if batch_tile is not None:
        TB = min(int(batch_tile), B)
        if TB <= 0 or B % TB != 0:
            TB = B
    else:
        TB = _pick_batch_tile(B, V, D, itemsize, vmem_limit)
    grid = (B // TB,)

    view_specs = [pl.BlockSpec((TB, D), lambda i: (i, 0)) for _ in range(V)]
    param_specs = [
        pl.BlockSpec((D, V_pad), lambda i: (0, 0)),
        pl.BlockSpec((1, V_pad), lambda i: (0, 0)),
    ]

    joint, att = pl.pallas_call(
        functools.partial(_fusion_kernel, V),
        grid=grid,
        in_specs=view_specs + param_specs,
        out_specs=(
            pl.BlockSpec((TB, D), lambda i: (i, 0)),
            pl.BlockSpec((TB, V), lambda i: (i, 0)),   # V == full last dim -> legal
        ),
        out_shape=(
            jax.ShapeDtypeStruct((B, D), joint_dtype),
            jax.ShapeDtypeStruct((B, V), jnp.float32),
        ),
        compiler_params=pltpu.CompilerParams(
            dimension_semantics=("parallel",),
            vmem_limit_bytes=vmem_limit,
        ),
    )(*views_emb, w_t, bias_mask)

    # features=False => att_views has shape (B, V, 1) in the PyTorch module.
    return {"joint_rep": joint, "att_views": att[:, :, None]}


def _reference(views_emb, views_available, weight, bias):
    """Pure-JAX reference mirroring the PyTorch forward (avg + adaptive softmax)."""
    stacked = jnp.stack([v.astype(jnp.float32) for v in views_emb], axis=1)  # (B, V, D)
    pooled = jnp.mean(stacked, axis=1)                                       # (B, D)
    logits = jnp.dot(pooled, weight.astype(jnp.float32).T,
                     precision=jax.lax.Precision.HIGHEST) + bias.astype(jnp.float32)
    masked = jnp.where(views_available[None, :], logits, -jnp.inf)
    att = jax.nn.softmax(masked, axis=1)                                     # (B, V)
    prod = stacked * att[:, :, None]
    joint = jnp.sum(jnp.where(jnp.isnan(prod), 0.0, prod), axis=1)           # (B, D)
    return joint, att[:, :, None]


if __name__ == "__main__":
    key = jax.random.PRNGKey(0)
    k1, k2 = jax.random.split(key)

    # ---------------- Case 1: small f32 config, one missing view ----------------
    B, V, D = 2, 4, 32
    k_views, k_w, k_b = jax.random.split(k1, 3)
    weight = jax.random.normal(k_w, (V, D), dtype=jnp.float32) * (1.0 / jnp.sqrt(D))
    bias = jax.random.normal(k_b, (V,), dtype=jnp.float32) * 0.01
    vkeys = jax.random.split(k_views, V)
    views_emb = [jax.random.normal(vk, (B, D), dtype=jnp.float32) for vk in vkeys]
    views_available = jnp.array([True, True, False, True])
    views_emb[2] = jnp.zeros((B, D), dtype=jnp.float32)   # the "missing" view

    out = fusion_forward(views_emb, views_available, weight, bias)
    joint = jax.block_until_ready(out["joint_rep"])
    att = jax.block_until_ready(out["att_views"])
    ref_joint, ref_att = _reference(views_emb, views_available, weight, bias)

    assert joint.shape == (B, D) and att.shape == (B, V, 1)
    # bf16 MXU logits -> small att error; weighted sum stays f32 for f32 views.
    assert jnp.allclose(att, ref_att, atol=5e-3, rtol=5e-3)
    assert jnp.allclose(joint, ref_joint, atol=1e-2, rtol=1e-2)
    # masked (missing) view must get exactly zero attention
    assert jnp.all(att[:, 2, 0] == 0.0)

    # ------- Case 2: bf16 views, larger batch, explicit batch tiling (grid>1) -------
    B2, V2, D2 = 64, 3, 128
    k_views2, k_w2, k_b2 = jax.random.split(k2, 3)
    weight2 = jax.random.normal(k_w2, (V2, D2), dtype=jnp.float32) * (1.0 / jnp.sqrt(D2))
    bias2 = jax.random.normal(k_b2, (V2,), dtype=jnp.float32) * 0.01
    vkeys2 = jax.random.split(k_views2, V2)
    views_emb2 = [jax.random.normal(vk, (B2, D2), dtype=jnp.float32).astype(jnp.bfloat16)
                  for vk in vkeys2]
    views_available2 = jnp.array([True, False, True])     # view 1 missing (finite garbage)

    out2 = fusion_forward(views_emb2, views_available2, weight2, bias2, batch_tile=16)
    joint2 = jax.block_until_ready(out2["joint_rep"])
    att2 = jax.block_until_ready(out2["att_views"])
    ref_joint2, ref_att2 = _reference(views_emb2, views_available2, weight2, bias2)

    assert joint2.shape == (B2, D2) and att2.shape == (B2, V2, 1)
    assert jnp.allclose(att2, ref_att2, atol=5e-3, rtol=5e-3)
    # bf16 weighted-sum multiply (f32 accumulate) -> bf16-level tolerance here.
    assert jnp.allclose(joint2, ref_joint2, atol=3e-2, rtol=3e-2)
    assert jnp.all(att2[:, 1, 0] == 0.0)

    print("KERNEL_OK")
</pallas_src>

<mosaic_0001>
module attributes {stable_mosaic.version = 11 : i64} {
  func.func @_fusion_kernel(%arg0: i32, %arg1: memref<2x32xf32, #tpu.memory_space<vmem>>, %arg2: memref<2x32xf32, #tpu.memory_space<vmem>>, %arg3: memref<2x32xf32, #tpu.memory_space<vmem>>, %arg4: memref<2x32xf32, #tpu.memory_space<vmem>>, %arg5: memref<32x128xbf16, #tpu.memory_space<vmem>>, %arg6: memref<1x128xf32, #tpu.memory_space<vmem>>, %arg7: memref<2x32xf32, #tpu.memory_space<vmem>>, %arg8: memref<2x4xf32, #tpu.memory_space<vmem>>) attributes {dimension_semantics = [#tpu.dimension_semantics<parallel>], iteration_bounds = array<i64: 1>, scalar_prefetch = 0 : i64, scratch_operands = 0 : i64, tpu.core_type = #tpu.core_type<tc>, window_params = [{transform_indices = @transform_0, window_bounds = array<i64: 2, 32>}, {transform_indices = @transform_1, window_bounds = array<i64: 2, 32>}, {transform_indices = @transform_2, window_bounds = array<i64: 2, 32>}, {transform_indices = @transform_3, window_bounds = array<i64: 2, 32>}, {pipeline_mode = #tpu.pipeline_mode<synchronous>, transform_indices = @transform_4, window_bounds = array<i64: 32, 128>}, {pipeline_mode = #tpu.pipeline_mode<synchronous>, transform_indices = @transform_5, window_bounds = array<i64: 1, 128>}, {transform_indices = @transform_6, window_bounds = array<i64: 2, 32>}, {transform_indices = @transform_7, window_bounds = array<i64: 2, 4>}]} {
    %c0 = arith.constant 0 : index
    %c0_0 = arith.constant 0 : index
    %0 = vector.load %arg1[%c0, %c0_0] : memref<2x32xf32, #tpu.memory_space<vmem>>, vector<2x32xf32>
    %c0_1 = arith.constant 0 : index
    %c0_2 = arith.constant 0 : index
    %1 = vector.load %arg2[%c0_1, %c0_2] : memref<2x32xf32, #tpu.memory_space<vmem>>, vector<2x32xf32>
    %2 = arith.addf %0, %1 : vector<2x32xf32>
    %c0_3 = arith.constant 0 : index
    %c0_4 = arith.constant 0 : index
    %3 = vector.load %arg3[%c0_3, %c0_4] : memref<2x32xf32, #tpu.memory_space<vmem>>, vector<2x32xf32>
    %4 = arith.addf %2, %3 : vector<2x32xf32>
    %c0_5 = arith.constant 0 : index
    %c0_6 = arith.constant 0 : index
    %5 = vector.load %arg4[%c0_5, %c0_6] : memref<2x32xf32, #tpu.memory_space<vmem>>, vector<2x32xf32>
    %6 = arith.addf %4, %5 : vector<2x32xf32>
    %7 = arith.truncf %6 : vector<2x32xf32> to vector<2x32xbf16>
    %c0_7 = arith.constant 0 : index
    %c0_8 = arith.constant 0 : index
    %8 = vector.load %arg5[%c0_7, %c0_8] : memref<32x128xbf16, #tpu.memory_space<vmem>>, vector<32x128xbf16>
    %cst = arith.constant dense<0.000000e+00> : vector<2x128xf32>
    %9 = tpu.matmul %7, %8, %cst {dimension_numbers = #tpu.dot_dimension_numbers<[1], [0], [0], [1], [0, 0, 1, 1], [], []>} : vector<2x32xbf16>, vector<32x128xbf16>, vector<2x128xf32> -> vector<2x128xf32>
    %c0_9 = arith.constant 0 : index
    %c0_10 = arith.constant 0 : index
    %10 = vector.load %arg6[%c0_9, %c0_10] : memref<1x128xf32, #tpu.memory_space<vmem>>, vector<1x128xf32>
    %11 = vector.broadcast %10 : vector<1x128xf32> to vector<2x128xf32>
    %12 = arith.addf %9, %11 : vector<2x128xf32>
    %cst_11 = arith.constant dense<0xFF800000> : vector<2xf32>
    %13 = vector.multi_reduction <maximumf>, %12, %cst_11 [1] : vector<2x128xf32> to vector<2xf32>
    %14 = vector.shape_cast %13 : vector<2xf32> to vector<2x1xf32>
    %15 = vector.broadcast %14 : vector<2x1xf32> to vector<2x128xf32>
    %16 = arith.subf %12, %15 : vector<2x128xf32>
    %17 = math.exp %16 : vector<2x128xf32>
    %cst_12 = arith.constant dense<0.000000e+00> : vector<2xf32>
    %18 = vector.multi_reduction <add>, %17, %cst_12 [1] : vector<2x128xf32> to vector<2xf32>
    %19 = vector.shape_cast %18 : vector<2xf32> to vector<2x1xf32>
    %20 = tpu.reciprocal %19 {approx = true} : vector<2x1xf32> -> vector<2x1xf32>
    %21 = vector.broadcast %20 : vector<2x1xf32> to vector<2x128xf32>
    %22 = arith.mulf %17, %21 : vector<2x128xf32>
    %23 = arith.cmpf one, %22, %22 : vector<2x128xf32>
    %cst_13 = arith.constant 0.000000e+00 : f32
    %24 = vector.broadcast %cst_13 : f32 to vector<2x128xf32>
    %25 = arith.select %23, %24, %22 : vector<2x128xi1>, vector<2x128xf32>
    %cst_14 = arith.constant 0.000000e+00 : f32
    %26 = vector.broadcast %cst_14 : f32 to vector<2x32xf32>
    %c0_15 = arith.constant 0 : index
    %c0_16 = arith.constant 0 : index
    %27 = vector.load %arg1[%c0_15, %c0_16] : memref<2x32xf32, #tpu.memory_space<vmem>>, vector<2x32xf32>
    %28 = arith.cmpf one, %27, %27 : vector<2x32xf32>
    %cst_17 = arith.constant 0.000000e+00 : f32
    %29 = vector.broadcast %cst_17 : f32 to vector<2x32xf32>
    %30 = arith.select %28, %29, %27 : vector<2x32xi1>, vector<2x32xf32>
    %31 = vector.extract_strided_slice %25 {offsets = [0, 0], sizes = [2, 1], strides = [1, 1]} : vector<2x128xf32> to vector<2x1xf32>
    %32 = vector.broadcast %31 : vector<2x1xf32> to vector<2x32xf32>
    %33 = arith.mulf %30, %32 : vector<2x32xf32>
    %34 = arith.addf %26, %33 : vector<2x32xf32>
    %c0_18 = arith.constant 0 : index
    %c0_19 = arith.constant 0 : index
    %35 = vector.load %arg2[%c0_18, %c0_19] : memref<2x32xf32, #tpu.memory_space<vmem>>, vector<2x32xf32>
    %36 = arith.cmpf one, %35, %35 : vector<2x32xf32>
    %cst_20 = arith.constant 0.000000e+00 : f32
    %37 = vector.broadcast %cst_20 : f32 to vector<2x32xf32>
    %38 = arith.select %36, %37, %35 : vector<2x32xi1>, vector<2x32xf32>
    %39 = vector.extract_strided_slice %25 {offsets = [0, 1], sizes = [2, 1], strides = [1, 1]} : vector<2x128xf32> to vector<2x1xf32>
    %40 = vector.broadcast %39 : vector<2x1xf32> to vector<2x32xf32>
    %41 = arith.mulf %38, %40 : vector<2x32xf32>
    %42 = arith.addf %34, %41 : vector<2x32xf32>
    %c0_21 = arith.constant 0 : index
    %c0_22 = arith.constant 0 : index
    %43 = vector.load %arg3[%c0_21, %c0_22] : memref<2x32xf32, #tpu.memory_space<vmem>>, vector<2x32xf32>
    %44 = arith.cmpf one, %43, %43 : vector<2x32xf32>
    %cst_23 = arith.constant 0.000000e+00 : f32
    %45 = vector.broadcast %cst_23 : f32 to vector<2x32xf32>
    %46 = arith.select %44, %45, %43 : vector<2x32xi1>, vector<2x32xf32>
    %47 = vector.extract_strided_slice %25 {offsets = [0, 2], sizes = [2, 1], strides = [1, 1]} : vector<2x128xf32> to vector<2x1xf32>
    %48 = vector.broadcast %47 : vector<2x1xf32> to vector<2x32xf32>
    %49 = arith.mulf %46, %48 : vector<2x32xf32>
    %50 = arith.addf %42, %49 : vector<2x32xf32>
    %c0_24 = arith.constant 0 : index
    %c0_25 = arith.constant 0 : index
    %51 = vector.load %arg4[%c0_24, %c0_25] : memref<2x32xf32, #tpu.memory_space<vmem>>, vector<2x32xf32>
    %52 = arith.cmpf one, %51, %51 : vector<2x32xf32>
    %cst_26 = arith.constant 0.000000e+00 : f32
    %53 = vector.broadcast %cst_26 : f32 to vector<2x32xf32>
    %54 = arith.select %52, %53, %51 : vector<2x32xi1>, vector<2x32xf32>
    %55 = vector.extract_strided_slice %25 {offsets = [0, 3], sizes = [2, 1], strides = [1, 1]} : vector<2x128xf32> to vector<2x1xf32>
    %56 = vector.broadcast %55 : vector<2x1xf32> to vector<2x32xf32>
    %57 = arith.mulf %54, %56 : vector<2x32xf32>
    %58 = arith.addf %50, %57 : vector<2x32xf32>
    %c0_27 = arith.constant 0 : index
    %c0_28 = arith.constant 0 : index
    %59 = vector.load %arg7[%c0_27, %c0_28] : memref<2x32xf32, #tpu.memory_space<vmem>>, vector<2x32xf32>
    tpu.vector_store %arg7[%c0_27, %c0_28], %58 {strides = array<i32>} : memref<2x32xf32, #tpu.memory_space<vmem>>, vector<2x32xf32>,
    %60 = vector.extract_strided_slice %22 {offsets = [0, 0], sizes = [2, 4], strides = [1, 1]} : vector<2x128xf32> to vector<2x4xf32>
    %c0_29 = arith.constant 0 : index
    %c0_30 = arith.constant 0 : index
    %61 = vector.load %arg8[%c0_29, %c0_30] : memref<2x4xf32, #tpu.memory_space<vmem>>, vector<2x4xf32>
    tpu.vector_store %arg8[%c0_29, %c0_30], %60 {strides = array<i32>} : memref<2x4xf32, #tpu.memory_space<vmem>>, vector<2x4xf32>,
    return
  }
  func.func @transform_0(%arg0: i32) -> (i32, i32) {
    %c0_i32 = arith.constant 0 : i32
    %c0_i32_0 = arith.constant 0 : i32
    return %arg0, %c0_i32 : i32, i32
  }
  func.func @transform_1(%arg0: i32) -> (i32, i32) {
    %c0_i32 = arith.constant 0 : i32
    %c0_i32_0 = arith.constant 0 : i32
    return %arg0, %c0_i32 : i32, i32
  }
  func.func @transform_2(%arg0: i32) -> (i32, i32) {
    %c0_i32 = arith.constant 0 : i32
    %c0_i32_0 = arith.constant 0 : i32
    return %arg0, %c0_i32 : i32, i32
  }
  func.func @transform_3(%arg0: i32) -> (i32, i32) {
    %c0_i32 = arith.constant 0 : i32
    %c0_i32_0 = arith.constant 0 : i32
    return %arg0, %c0_i32 : i32, i32
  }
  func.func @transform_4(%arg0: i32) -> (i32, i32) {
    %c0_i32 = arith.constant 0 : i32
    %c0_i32_0 = arith.constant 0 : i32
    %c0_i32_1 = arith.constant 0 : i32
    return %c0_i32, %c0_i32_0 : i32, i32
  }
  func.func @transform_5(%arg0: i32) -> (i32, i32) {
    %c0_i32 = arith.constant 0 : i32
    %c0_i32_0 = arith.constant 0 : i32
    %c0_i32_1 = arith.constant 0 : i32
    return %c0_i32, %c0_i32_0 : i32, i32
  }
  func.func @transform_6(%arg0: i32) -> (i32, i32) {
    %c0_i32 = arith.constant 0 : i32
    %c0_i32_0 = arith.constant 0 : i32
    return %arg0, %c0_i32 : i32, i32
  }
  func.func @transform_7(%arg0: i32) -> (i32, i32) {
    %c0_i32 = arith.constant 0 : i32
    %c0_i32_0 = arith.constant 0 : i32
    return %arg0, %c0_i32 : i32, i32
  }
}

</mosaic_0001>

<bundles_post_ra>
// kernel: tpu_custom_call.1
= control target key start
LH: loop header
LB: loop body
LE: loop exit
PB: predicated region body
PF: predicated region fallthrough
CT: control target
= control target key end

     0   :  { %13 = vsyncpa [#allocation3], 0  ;;  %s487_s0 = inlined_call_operand.hbm [shape: f32[2,32], index: 0, kind: input, shape index: {}]   ;;  %s488_s1 = inlined_call_operand.vmem [shape: f32[2,32], index: 1, kind: input, shape index: {}]   ;;  %s489_s2 = inlined_call_operand.vmem [shape: f32[2,32], index: 2, kind: input, shape index: {}]   ;;  %s490_s3 = inlined_call_operand.vmem [shape: f32[2,32], index: 3, kind: input, shape index: {}]   ;;  %s491_s4 = inlined_call_operand.hbm [shape: bf16[32,128], index: 4, kind: input, shape index: {}]   ;;  %s492_s5 = inlined_call_operand.vmem [shape: f32[1,128], index: 5, kind: input, shape index: {}]   ;;  %s493_s6 = inlined_call_operand.hbm [shape: f32[2,32], index: 6, kind: output, shape index: {0}]   ;;  %s494_s7 = inlined_call_operand.hbm [shape: f32[2,4], index: 7, kind: output, shape index: {1}]  }
   0x1   :  { %14 = vsyncpa [#allocation6], 0 }
   0x2   :  { %15 = vsyncpa [#allocation4], 0 }
   0x3   :  { %16 = vsyncpa [#allocation9], 0  ;;  %s344_s24 = smov [#allocation2]   ;;  %s345_s26 = smov [#allocation5]  }
   0x4   :  { %s23_s25 = sshll.u32 %s344_s24, 4  ;;  %s38_s27 = sshll.u32 %s345_s26, 4  ;;  %s24_s25 = int_to_ptr.vmem [resolvable:$true] %s23_s25  ;;  %s396_s27 = int_to_ptr.vmem [resolvable:$true] %s38_s27 }
   0x5   :  { %s248_s30 = scalar_lea.hbm %s487_s0, 32 }
   0x6   :  { %p249_p0 = scmp.ne.s32.totalorder %s487_s0, %s248_s30  ;;  %p252_p1 = scmp.lt.u32.totalorder %s248_s30, %s487_s0 }
   0x8   :  { %p254_p2 = pnand %p252_p1, %p249_p0 }
   0xa   :  { %257 = shalt.err (!%p254_p2)
}
   0xb   :  { %s258_s12 = scalar_lea.vmem %s24_s25, 32  ;;  %p263_p4 = scmp.lt.s32.totalorder %s24_s25, %s24_s25 }
   0xc   :  { %p259_p3 = scmp.ne.s32.totalorder %s24_s25, %s258_s12  ;;  %p264_p5 = scmp.lt.s32.totalorder %s258_s12, %s258_s12 }
   0xe   :  { %p265_p6 = por %p264_p5, %p263_p4 }
  0x10   :  { %p266_p7 = pnand %p265_p6, %p259_p3 }
  0x12   :  { %269 = shalt.err (!%p266_p7)
}
  0x13   :  { %26 = dma.hbm_to_vmem [thread:$0]  %s487_s0, 32, %s24_s25, [#allocation3]  }
  0x14   :  { %s270_s17 = scalar_lea.hbm %s491_s4, 256 }
  0x15   :  { %p271_p8 = scmp.ne.s32.totalorder %s491_s4, %s270_s17  ;;  %p274_p9 = scmp.lt.u32.totalorder %s270_s17, %s491_s4 }
  0x17   :  { %p276_p10 = pnand %p274_p9, %p271_p8 }
  0x19   :  { %279 = shalt.err (!%p276_p10)
}
  0x1a   :  { %s280_s22 = scalar_lea.vmem %s396_s27, 256  ;;  %p285_p12 = scmp.lt.s32.totalorder %s396_s27, %s396_s27 }
  0x1b   :  { %p281_p11 = scmp.ne.s32.totalorder %s396_s27, %s280_s22  ;;  %p286_p13 = scmp.lt.s32.totalorder %s280_s22, %s280_s22 }
  0x1d   :  { %p287_p0 = por %p286_p13, %p285_p12 }
  0x1f   :  { %p288_p1 = pnand %p287_p0, %p281_p11 }
  0x21   :  { %291 = shalt.err (!%p288_p1)
}
  0x22   :  { %s346_s0 = smov 64   ;;  %s347_s23 = smov 4  }
  0x23   :  { %44 = dma.hbm_to_vmem [thread:$0]  %s491_s4, 256, %s396_s27, [#allocation6], %s346_s0, %s346_s0, %s347_s23  }
  0x24   :  { %336 = dma.done.wait [#allocation3], 32  }
  0x25   :  { %337 = vsyncadd [#allocation3], 4294967264 }
  0x26   :  { %338 = dma.done.wait [#allocation6], 256  }
  0x27   :  { %339 = vsyncadd [#allocation6], 4294967040  ;;  %v348_v0 = vmov 0.0   ;;  %vm349_vm0 = vmmov 0   ;;  %v242_v1 = vld [vmem:[#allocation5] sm:$0xff]   ;;  %v243_v2 = vld [vmem:[#allocation5 + $0x8] sm:$0xff]  }
  0x28   :  { %217 = vmatprep.subr.bf16.mxu0 %v348_v0  ;;  %221 = vmatprep.mubr.msk.bf16.mxu0 %vm349_vm0, %v348_v0  ;;  %v427_v3 = vld [vmem:[#allocation2] sm:$0x3]  ;;  %vm85_vm1 = vcmask 261120   ;;  %vm129_vm2 = vcmask 1041408   ;;  %v350_v23 = vmov 2   ;;  %v351_v24 = vmov 0  }
  0x29   :  { %218 = vmatpush3.bf16.msra.mxu0 %v242_v1  ;;  %v432_v4 = vld [vmem:[%s488_s1] sm:$0x3]  ;;  %239 = vset.pattern.permute.xlu0 %v350_v23  ;;  %vm178_vm3 = vcmask 25600   ;;  %v352_v29 = vmov 1   ;;  %v353_v30 = vmov 3  }
  0x2a   :  { %v437_v5 = vld [vmem:[%s489_s2] sm:$0x3]  ;;  %219 = vmatprep.subr.bf16.mxu0 %v348_v0  ;;  %v56_v6 = vadd.f32 %v432_v4, %v427_v3  ;;  %237 = vset.pattern.permute.xlu1 %v351_v24 }
  0x2b   :  { %v444_v7 = vld [vmem:[%s490_s3] sm:$0x3]  ;;  %s354_s3 = smov [#allocation8]  }
  0x2c   :  { %v58_v8 = vadd.f32 %v437_v5, %v56_v6  ;;  %v210_v11 = vld [vmem:[%s492_s5] ss:$0 sm:$0xff]  ;;  %s196_s5 = sshll.u32 %s354_s3, 4  ;;  %s197_s5 = int_to_ptr.vmem [resolvable:$true] %s196_s5 }
  0x2d   :  { %220 = vmatpush3.bf16.msra.mxu0 %v243_v2  ;;  %s292_s8 = scalar_lea.vmem %s197_s5, 32  ;;  %p297_p3 = scmp.lt.s32.totalorder %s197_s5, %s197_s5 }
  0x2e   :  { %v60_v9 = vadd.f32 %v444_v7, %v58_v8  ;;  %p293_p2 = scmp.ne.s32.totalorder %s197_s5, %s292_s8  ;;  %p298_p4 = scmp.lt.s32.totalorder %s292_s8, %s292_s8 }
  0x30   :  { %v61_v10 = vpack.c.bf16 %v60_v9, %v60_v9  ;;  %p299_p5 = por %p298_p4, %p297_p3 }
  0x32   :  { %222 = vmatmul.mubr.msk.bf16.vlgmr.msra.gmra.mrb[0].mxu0 %vm85_vm1, %v61_v10  ;;  %p300_p6 = pnand %p299_p5, %p293_p2 }
 0x105   :  { %v123_v12 = vpop.f32.mrb[0].mxu0 }
 0x106   :  { %v124_v13 = vadd.f32 %v210_v11, %v123_v12  ;;  %v223_v14 = vpop.f32.mrb[1].mxu0 }
 0x107   :  { %v126_v15 = vpop.f32.mrb[2].mxu0 }
 0x108   :  { %v224_v16 = vpop.f32.mrb[3].mxu0  ;;  %v130_v17 = vsel %vm129_vm2, %v124_v13, -inf }
 0x109   :  { %131 = vmax.xlane.f32.xlu0 %v130_v17 }
 0x196   :  { %v132_v18 = vpop.xlane.xlu0 %131 }
 0x197   :  { %v133_v19 = vsub.f32 %v124_v13, %v132_v18 }
 0x199   :  { %v134_v20 = vmul.f32 1.442695, %v133_v19 }
 0x19b   :  { %244 = vpow2.f32 %v134_v20 }
 0x1a5   :  { %v245_v21 = vpop.eup %244 }
 0x1a6   :  { %v136_v22 = vsel %vm129_vm2, %v245_v21, 0.0 }
 0x1a7   :  { %137 = vadd.xlane.f32.xlu0 %v136_v22 }
 0x234   :  { %v138_v25 = vpop.xlane.xlu0 %137 }
 0x235   :  { %246 = vrcp.f32 %v138_v25 }
 0x23f   :  { %v247_v26 = vpop.eup %246 }
 0x240   :  { %v140_v27 = vmul.f32 %v247_v26, %v245_v21 }
 0x242   :  { %vm141_vm4 = vcmp.ne.f32.partialorder %v140_v27, %v140_v27  ;;  %179 = vst.msk [vmem:[#allocation8] sm:$0x3] %vm178_vm3, %v140_v27 }
 0x243   :  { %v142_v28 = vsel %vm141_vm4, 0.0, %v140_v27 }
 0x244   :  { %163 = vperm.xlu0 %239, %v142_v28   ;;  %147 = vperm.xlu1 %237, %v142_v28  }
 0x248   :  { %238 = vset.pattern.permute.xlu1 %v352_v29  ;;  %241 = vset.pattern.permute.xlu0 %v353_v30 }
 0x249   :  { %155 = vperm.xlu1 %238, %v142_v28  }
 0x24d   :  { %240 = vset.pattern.permute.xlu1 %v353_v30 }
 0x24e   :  { %171 = vperm.xlu1 %240, %v142_v28  }
 0x24f   :  { %303 = shalt.err (!%p300_p6)
}
 0x250   :  { %s304_s11 = scalar_lea.hbm %s494_s7, 32 }
 0x251   :  { %p305_p7 = scmp.ne.s32.totalorder %s494_s7, %s304_s11  ;;  %p308_p8 = scmp.lt.u32.totalorder %s304_s11, %s494_s7 }
 0x253   :  { %p310_p9 = pnand %p308_p8, %p305_p7 }
 0x255   :  { %313 = shalt.err (!%p310_p9)
}
 0x256   :  { %199 = dma.vmem_to_hbm [thread:$0]  %s197_s5, 32, %s494_s7, [#allocation9]   ;;  %vm143_vm5 = vcmp.ne.f32.partialorder %v427_v3, %v427_v3  ;;  %vm152_vm6 = vcmp.ne.f32.partialorder %v432_v4, %v432_v4  ;;  %vm160_vm7 = vcmp.ne.f32.partialorder %v437_v5, %v437_v5  ;;  %vm168_vm8 = vcmp.ne.f32.partialorder %v444_v7, %v444_v7 }
 0x257   :  { %v144_v32 = vsel %vm143_vm5, 0.0, %v427_v3  ;;  %v153_v33 = vsel %vm152_vm6, 0.0, %v432_v4  ;;  %v161_v34 = vsel %vm160_vm7, 0.0, %v437_v5  ;;  %v169_v41 = vsel %vm168_vm8, 0.0, %v444_v7  ;;  %s355_s7 = smov [#allocation7]  }
 0x258   :  { %s186_s18 = sshll.u32 %s355_s7, 4  ;;  %vm176_vm9 = vcmask 254976   ;;  %s187_s18 = int_to_ptr.vmem [resolvable:$true] %s186_s18 }
 0x259   :  { %s314_s19 = scalar_lea.vmem %s187_s18, 32  ;;  %p319_p11 = scmp.lt.s32.totalorder %s187_s18, %s187_s18 }
 0x25a   :  { %p315_p10 = scmp.ne.s32.totalorder %s187_s18, %s314_s19  ;;  %p320_p12 = scmp.lt.s32.totalorder %s314_s19, %s314_s19 }
 0x25c   :  { %p321_p13 = por %p320_p12, %p319_p11 }
 0x25e   :  { %p322_p0 = pnand %p321_p13, %p315_p10 }
 0x2c3   :  { %v148_v31 = vpop.permute.xlu1 %147  ;;  %v164_v35 = vpop.permute.xlu0 %163 }
 0x2c4   :  { %v150_v37 = vmul.f32 %v148_v31, %v144_v32  ;;  %v166_v39 = vmul.f32 %v164_v35, %v161_v34 }
 0x2c8   :  { %v156_v36 = vpop.permute.xlu1 %155 }
 0x2c9   :  { %v158_v38 = vmul.f32 %v156_v36, %v153_v33 }
 0x2cb   :  { %v159_v40 = vadd.f32 %v158_v38, %v150_v37 }
 0x2cd   :  { %v167_v42 = vadd.f32 %v166_v39, %v159_v40  ;;  %v172_v43 = vpop.permute.xlu1 %171 }
 0x2ce   :  { %v174_v44 = vmul.f32 %v172_v43, %v169_v41 }
 0x2d0   :  { %v175_v45 = vadd.f32 %v174_v44, %v167_v42 }
 0x2d2   :  { %177 = vst.msk [vmem:[#allocation7] sm:$0x3] %vm176_vm9, %v175_v45 }
 0x2d3   :  { %325 = shalt.err (!%p322_p0)
}
 0x2d4   :  { %s326_s22 = scalar_lea.hbm %s493_s6, 32 }
 0x2d5   :  { %p327_p1 = scmp.ne.s32.totalorder %s493_s6, %s326_s22  ;;  %p330_p2 = scmp.lt.u32.totalorder %s326_s22, %s493_s6 }
 0x2d7   :  { %p332_p3 = pnand %p330_p2, %p327_p1 }
 0x2d9   :  { %335 = shalt.err (!%p332_p3)
}
 0x2da   :  { %189 = dma.vmem_to_hbm [thread:$0]  %s187_s18, 32, %s493_s6, [#allocation4]  }
 0x2db   :  { %340 = dma.done.wait [#allocation4], 32  }
 0x2dc   :  { %341 = vsyncadd [#allocation4], 4294967264 }
 0x2dd   :  { %342 = dma.done.wait [#allocation9], 32  }
 0x2de   :  { %343 = vsyncadd [#allocation9], 4294967264 }
 0x2df   :  { %206 = vsyncpa [#allocation3], 1 }
 0x2e0   :  { %207 = vsyncpa [#allocation6], 1 }
 0x2e1   :  { %208 = vsyncpa [#allocation4], 1 }
 0x2e2   :  { %209 = vsyncpa [#allocation9], 1 }

</bundles_post_ra>
